<compile_context>
chip_gen: v6e
topology: v6e:2x2x1
jax: 0.10.0
libtpu: 0.0.40
codegen_flags: <defaults>
</compile_context>

<pallas_src>
import functools

import jax
import jax.numpy as jnp
from jax.experimental import pallas as pl
from jax.experimental.pallas import tpu as pltpu

LANE = 128
SUBLANE = 8


def _round_up(x, m):
    return (x + m - 1) // m * m


def _dice_kernel(y_ref, t_ref, out_ref, inter_acc, p_acc, t_acc, *, epsilon):
    k = pl.program_id(0)

    @pl.when(k == 0)
    def _():
        inter_acc[...] = jnp.zeros_like(inter_acc)
        p_acc[...] = jnp.zeros_like(p_acc)
        t_acc[...] = jnp.zeros_like(t_acc)

    # Hot path: (N, R, 128) blocks, full (8,128) vregs.
    y = y_ref[...].astype(jnp.float32)
    t = t_ref[...].astype(jnp.float32)
    # sigmoid(x) = 0.5*(tanh(0.5*x)+1): single EUP push instead of exp+recip.
    p = 0.5 * (jnp.tanh(0.5 * y) + 1.0)

    # Lane-dense partial sums: reduce only the chunk (sublane) axis per step.
    # The cross-lane (128 -> 1) reduce happens once, in the finalize block.
    inter_acc[...] += jnp.sum(p * t, axis=1, keepdims=True)  # (N, 1, 128)
    p_acc[...] += jnp.sum(p, axis=1, keepdims=True)
    t_acc[...] += jnp.sum(t, axis=1, keepdims=True)

    @pl.when(k == pl.num_programs(0) - 1)
    def _():
        inter = jnp.sum(inter_acc[...], axis=-1)  # (N, 1)
        psum = jnp.sum(p_acc[...], axis=-1)
        tsum = jnp.sum(t_acc[...], axis=-1)
        dice = (2.0 * inter + epsilon) / (psum + tsum + epsilon)  # per-sample
        out_ref[...] = jnp.mean(dice, keepdims=True)  # (1, 1) scalar mean


def _choose_block_chunks(n, chunks, y_bytes, t_bytes,
                         target_block_bytes=2 << 20,
                         vmem_block_budget=32 << 20):
    """Pick #128-wide chunks per block: ~2 MiB per input block, VMEM-capped."""
    # ~target_block_bytes for the heaviest input's block
    r = max(SUBLANE, target_block_bytes // (n * LANE * max(y_bytes, t_bytes)))
    # both inputs, double-buffered, must stay inside the VMEM budget
    per_chunk = 2 * n * LANE * (y_bytes + t_bytes)
    r = min(r, max(SUBLANE, vmem_block_budget // per_chunk))
    # no point exceeding the actual data
    r = min(r, _round_up(chunks, SUBLANE))
    return max(SUBLANE, (r // SUBLANE) * SUBLANE)


def dice_coefficient_with_logits_loss(y, y_true, epsilon=1e-6, block_chunks=None):
    """y, y_true: NCHW arrays of identical shape. Returns scalar f32."""
    assert y.shape == y_true.shape
    n = y.shape[0]
    d = 1
    for s in y.shape[1:]:
        d *= s

    y2 = y.reshape(n, d)
    # 0/1 mask: bf16 is exact for binary targets and halves the mask's HBM bytes.
    t2 = y_true.reshape(n, d).astype(jnp.bfloat16)

    chunks = pl.cdiv(d, LANE)
    if block_chunks is None:
        r = _choose_block_chunks(n, chunks, y2.dtype.itemsize, t2.dtype.itemsize)
    else:
        r = max(SUBLANE, (int(block_chunks) // SUBLANE) * SUBLANE)

    chunks_pad = _round_up(max(chunks, r), r)
    d_pad = chunks_pad * LANE
    if d_pad != d:
        # Pad logits with a huge negative value (sigmoid -> exactly 0) and the
        # mask with 0 so the padded tail contributes nothing to any sum.
        y2 = jnp.pad(y2, ((0, 0), (0, d_pad - d)), constant_values=-1e9)
        t2 = jnp.pad(t2, ((0, 0), (0, d_pad - d)), constant_values=0)

    y3 = y2.reshape(n, chunks_pad, LANE)
    t3 = t2.reshape(n, chunks_pad, LANE)

    grid = (chunks_pad // r,)
    kernel = functools.partial(_dice_kernel, epsilon=float(epsilon))

    out = pl.pallas_call(
        kernel,
        out_shape=jax.ShapeDtypeStruct((1, 1), jnp.float32),
        grid_spec=pltpu.PrefetchScalarGridSpec(
            num_scalar_prefetch=0,
            grid=grid,
            in_specs=[
                pl.BlockSpec((n, r, LANE), lambda k: (0, k, 0)),
                pl.BlockSpec((n, r, LANE), lambda k: (0, k, 0)),
            ],
            out_specs=pl.BlockSpec((1, 1), lambda k: (0, 0)),
            scratch_shapes=[
                pltpu.VMEM((n, 1, LANE), jnp.float32),  # sum(p * t) per sample
                pltpu.VMEM((n, 1, LANE), jnp.float32),  # sum(p)     per sample
                pltpu.VMEM((n, 1, LANE), jnp.float32),  # sum(t)     per sample
            ],
        ),
        compiler_params=pltpu.CompilerParams(
            dimension_semantics=("arbitrary",),  # feature-reduction axis
            vmem_limit_bytes=48 << 20,           # explicit: >v5e 16MiB default, <v7x 64MiB physical
        ),
    )(y3, t3)
    return out[0, 0]


def _reference(y, y_true, epsilon=1e-6):
    n = y.shape[0]
    p = jax.nn.sigmoid(y.astype(jnp.float32)).reshape(n, -1)
    t = y_true.astype(jnp.float32).reshape(n, -1)
    inter = jnp.sum(p * t, axis=1)
    dice = (2.0 * inter + epsilon) / (jnp.sum(p, axis=1) + jnp.sum(t, axis=1) + epsilon)
    return jnp.mean(dice)


if __name__ == "__main__":
    key = jax.random.PRNGKey(0)
    k1, k2 = jax.random.split(key)

    # NCHW inputs, consistent with the PyTorch module's usage in a 2D U-Net.
    y = jax.random.normal(k1, (2, 4, 16, 16), dtype=jnp.float32)              # logits
    y_true = jax.random.bernoulli(k2, 0.3, (2, 4, 16, 16)).astype(jnp.float32)  # 0/1 mask

    loss = jax.block_until_ready(dice_coefficient_with_logits_loss(y, y_true))
    ref = jax.block_until_ready(_reference(y, y_true))

    assert jnp.allclose(loss, ref, atol=1e-5, rtol=1e-5), (loss, ref)
    print("KERNEL_OK")
</pallas_src>

<mosaic_0001>
module attributes {stable_mosaic.version = 11 : i64} {
  func.func @_dice_kernel(%arg0: i32, %arg1: memref<2x8x128xf32, #tpu.memory_space<vmem>>, %arg2: memref<2x8x128xbf16, #tpu.memory_space<vmem>>, %arg3: memref<1x1xf32, #tpu.memory_space<vmem>>, %arg4: memref<2x1x128xf32, #tpu.memory_space<vmem>>, %arg5: memref<2x1x128xf32, #tpu.memory_space<vmem>>, %arg6: memref<2x1x128xf32, #tpu.memory_space<vmem>>) attributes {dimension_semantics = [#tpu.dimension_semantics<arbitrary>], iteration_bounds = array<i64: 1>, scalar_prefetch = 0 : i64, scratch_operands = 3 : i64, tpu.core_type = #tpu.core_type<tc>, window_params = [{transform_indices = @transform_0, window_bounds = array<i64: 2, 8, 128>}, {transform_indices = @transform_1, window_bounds = array<i64: 2, 8, 128>}, {pipeline_mode = #tpu.pipeline_mode<synchronous>, transform_indices = @transform_2, window_bounds = array<i64: 1, 1>}]} {
    %c0_i32 = arith.constant 0 : i32
    %0 = arith.cmpi eq, %arg0, %c0_i32 : i32
    %1 = arith.extui %0 : i1 to i32
    %c0_i32_0 = arith.constant 0 : i32
    %2 = arith.cmpi ne, %1, %c0_i32_0 : i32
    scf.if %2 {
      %cst_31 = arith.constant 0.000000e+00 : f32
      %32 = vector.broadcast %cst_31 : f32 to vector<2x1x128xf32>
      %c0_32 = arith.constant 0 : index
      %c0_33 = arith.constant 0 : index
      %c0_34 = arith.constant 0 : index
      %33 = vector.load %arg4[%c0_32, %c0_33, %c0_34] : memref<2x1x128xf32, #tpu.memory_space<vmem>>, vector<2x1x128xf32>
      tpu.vector_store %arg4[%c0_32, %c0_33, %c0_34], %32 {strides = array<i32>} : memref<2x1x128xf32, #tpu.memory_space<vmem>>, vector<2x1x128xf32>,
      %cst_35 = arith.constant 0.000000e+00 : f32
      %34 = vector.broadcast %cst_35 : f32 to vector<2x1x128xf32>
      %c0_36 = arith.constant 0 : index
      %c0_37 = arith.constant 0 : index
      %c0_38 = arith.constant 0 : index
      %35 = vector.load %arg5[%c0_36, %c0_37, %c0_38] : memref<2x1x128xf32, #tpu.memory_space<vmem>>, vector<2x1x128xf32>
      tpu.vector_store %arg5[%c0_36, %c0_37, %c0_38], %34 {strides = array<i32>} : memref<2x1x128xf32, #tpu.memory_space<vmem>>, vector<2x1x128xf32>,
      %cst_39 = arith.constant 0.000000e+00 : f32
      %36 = vector.broadcast %cst_39 : f32 to vector<2x1x128xf32>
      %c0_40 = arith.constant 0 : index
      %c0_41 = arith.constant 0 : index
      %c0_42 = arith.constant 0 : index
      %37 = vector.load %arg6[%c0_40, %c0_41, %c0_42] : memref<2x1x128xf32, #tpu.memory_space<vmem>>, vector<2x1x128xf32>
      tpu.vector_store %arg6[%c0_40, %c0_41, %c0_42], %36 {strides = array<i32>} : memref<2x1x128xf32, #tpu.memory_space<vmem>>, vector<2x1x128xf32>,
    } else {
    }
    %c0 = arith.constant 0 : index
    %c0_1 = arith.constant 0 : index
    %c0_2 = arith.constant 0 : index
    %3 = vector.load %arg1[%c0, %c0_1, %c0_2] : memref<2x8x128xf32, #tpu.memory_space<vmem>>, vector<2x8x128xf32>
    %c0_3 = arith.constant 0 : index
    %c0_4 = arith.constant 0 : index
    %c0_5 = arith.constant 0 : index
    %4 = vector.load %arg2[%c0_3, %c0_4, %c0_5] : memref<2x8x128xbf16, #tpu.memory_space<vmem>>, vector<2x8x128xbf16>
    %5 = arith.extf %4 : vector<2x8x128xbf16> to vector<2x8x128xf32>
    %cst = arith.constant 5.000000e-01 : f32
    %6 = vector.broadcast %cst : f32 to vector<2x8x128xf32>
    %7 = arith.mulf %6, %3 : vector<2x8x128xf32>
    %8 = math.tanh %7 : vector<2x8x128xf32>
    %cst_6 = arith.constant 1.000000e+00 : f32
    %9 = vector.broadcast %cst_6 : f32 to vector<2x8x128xf32>
    %10 = arith.addf %8, %9 : vector<2x8x128xf32>
    %cst_7 = arith.constant 5.000000e-01 : f32
    %11 = vector.broadcast %cst_7 : f32 to vector<2x8x128xf32>
    %12 = arith.mulf %11, %10 : vector<2x8x128xf32>
    %c0_8 = arith.constant 0 : index
    %c0_9 = arith.constant 0 : index
    %c0_10 = arith.constant 0 : index
    %13 = vector.load %arg4[%c0_8, %c0_9, %c0_10] : memref<2x1x128xf32, #tpu.memory_space<vmem>>, vector<2x1x128xf32>
    %14 = arith.mulf %12, %5 : vector<2x8x128xf32>
    %cst_11 = arith.constant dense<0.000000e+00> : vector<2x128xf32>
    %15 = vector.multi_reduction <add>, %14, %cst_11 [1] : vector<2x8x128xf32> to vector<2x128xf32>
    %16 = vector.shape_cast %15 : vector<2x128xf32> to vector<2x1x128xf32>
    %17 = arith.addf %13, %16 : vector<2x1x128xf32>
    %c0_12 = arith.constant 0 : index
    %c0_13 = arith.constant 0 : index
    %c0_14 = arith.constant 0 : index
    %18 = vector.load %arg4[%c0_12, %c0_13, %c0_14] : memref<2x1x128xf32, #tpu.memory_space<vmem>>, vector<2x1x128xf32>
    tpu.vector_store %arg4[%c0_12, %c0_13, %c0_14], %17 {strides = array<i32>} : memref<2x1x128xf32, #tpu.memory_space<vmem>>, vector<2x1x128xf32>,
    %c0_15 = arith.constant 0 : index
    %c0_16 = arith.constant 0 : index
    %c0_17 = arith.constant 0 : index
    %19 = vector.load %arg5[%c0_15, %c0_16, %c0_17] : memref<2x1x128xf32, #tpu.memory_space<vmem>>, vector<2x1x128xf32>
    %cst_18 = arith.constant dense<0.000000e+00> : vector<2x128xf32>
    %20 = vector.multi_reduction <add>, %12, %cst_18 [1] : vector<2x8x128xf32> to vector<2x128xf32>
    %21 = vector.shape_cast %20 : vector<2x128xf32> to vector<2x1x128xf32>
    %22 = arith.addf %19, %21 : vector<2x1x128xf32>
    %c0_19 = arith.constant 0 : index
    %c0_20 = arith.constant 0 : index
    %c0_21 = arith.constant 0 : index
    %23 = vector.load %arg5[%c0_19, %c0_20, %c0_21] : memref<2x1x128xf32, #tpu.memory_space<vmem>>, vector<2x1x128xf32>
    tpu.vector_store %arg5[%c0_19, %c0_20, %c0_21], %22 {strides = array<i32>} : memref<2x1x128xf32, #tpu.memory_space<vmem>>, vector<2x1x128xf32>,
    %c0_22 = arith.constant 0 : index
    %c0_23 = arith.constant 0 : index
    %c0_24 = arith.constant 0 : index
    %24 = vector.load %arg6[%c0_22, %c0_23, %c0_24] : memref<2x1x128xf32, #tpu.memory_space<vmem>>, vector<2x1x128xf32>
    %cst_25 = arith.constant dense<0.000000e+00> : vector<2x128xf32>
    %25 = vector.multi_reduction <add>, %5, %cst_25 [1] : vector<2x8x128xf32> to vector<2x128xf32>
    %26 = vector.shape_cast %25 : vector<2x128xf32> to vector<2x1x128xf32>
    %27 = arith.addf %24, %26 : vector<2x1x128xf32>
    %c0_26 = arith.constant 0 : index
    %c0_27 = arith.constant 0 : index
    %c0_28 = arith.constant 0 : index
    %28 = vector.load %arg6[%c0_26, %c0_27, %c0_28] : memref<2x1x128xf32, #tpu.memory_space<vmem>>, vector<2x1x128xf32>
    tpu.vector_store %arg6[%c0_26, %c0_27, %c0_28], %27 {strides = array<i32>} : memref<2x1x128xf32, #tpu.memory_space<vmem>>, vector<2x1x128xf32>,
    %c0_i32_29 = arith.constant 0 : i32
    %29 = arith.cmpi eq, %arg0, %c0_i32_29 : i32
    %30 = arith.extui %29 : i1 to i32
    %c0_i32_30 = arith.constant 0 : i32
    %31 = arith.cmpi ne, %30, %c0_i32_30 : i32
    scf.if %31 {
      %c0_31 = arith.constant 0 : index
      %c0_32 = arith.constant 0 : index
      %c0_33 = arith.constant 0 : index
      %32 = vector.load %arg4[%c0_31, %c0_32, %c0_33] : memref<2x1x128xf32, #tpu.memory_space<vmem>>, vector<2x1x128xf32>
      %cst_34 = arith.constant dense<0.000000e+00> : vector<2x1xf32>
      %33 = vector.multi_reduction <add>, %32, %cst_34 [2] : vector<2x1x128xf32> to vector<2x1xf32>
      %c0_35 = arith.constant 0 : index
      %c0_36 = arith.constant 0 : index
      %c0_37 = arith.constant 0 : index
      %34 = vector.load %arg5[%c0_35, %c0_36, %c0_37] : memref<2x1x128xf32, #tpu.memory_space<vmem>>, vector<2x1x128xf32>
      %cst_38 = arith.constant dense<0.000000e+00> : vector<2x1xf32>
      %35 = vector.multi_reduction <add>, %34, %cst_38 [2] : vector<2x1x128xf32> to vector<2x1xf32>
      %c0_39 = arith.constant 0 : index
      %c0_40 = arith.constant 0 : index
      %c0_41 = arith.constant 0 : index
      %36 = vector.load %arg6[%c0_39, %c0_40, %c0_41] : memref<2x1x128xf32, #tpu.memory_space<vmem>>, vector<2x1x128xf32>
      %cst_42 = arith.constant dense<0.000000e+00> : vector<2x1xf32>
      %37 = vector.multi_reduction <add>, %36, %cst_42 [2] : vector<2x1x128xf32> to vector<2x1xf32>
      %cst_43 = arith.constant 2.000000e+00 : f32
      %38 = vector.broadcast %cst_43 : f32 to vector<2x1xf32>
      %39 = arith.mulf %38, %33 : vector<2x1xf32>
      %cst_44 = arith.constant 9.99999997E-7 : f32
      %40 = vector.broadcast %cst_44 : f32 to vector<2x1xf32>
      %41 = arith.addf %39, %40 : vector<2x1xf32>
      %42 = arith.addf %35, %37 : vector<2x1xf32>
      %cst_45 = arith.constant 9.99999997E-7 : f32
      %43 = vector.broadcast %cst_45 : f32 to vector<2x1xf32>
      %44 = arith.addf %42, %43 : vector<2x1xf32>
      %45 = arith.divf %41, %44 : vector<2x1xf32>
      %46 = vector.shape_cast %45 : vector<2x1xf32> to vector<1x2x1xf32>
      %cst_46 = arith.constant dense<0.000000e+00> : vector<1xf32>
      %47 = vector.multi_reduction <add>, %46, %cst_46 [1, 2] : vector<1x2x1xf32> to vector<1xf32>
      %48 = vector.shape_cast %47 : vector<1xf32> to vector<1x1x1xf32>
      %49 = vector.extract %48[0, 0, 0] : f32 from vector<1x1x1xf32>
      %50 = vector.broadcast %49 : f32 to vector<1x1xf32>
      %cst_47 = arith.constant 2.000000e+00 : f32
      %51 = vector.broadcast %cst_47 : f32 to vector<1x1xf32>
      %52 = arith.divf %50, %51 : vector<1x1xf32>
      %c0_48 = arith.constant 0 : index
      %c0_49 = arith.constant 0 : index
      %53 = vector.load %arg3[%c0_48, %c0_49] : memref<1x1xf32, #tpu.memory_space<vmem>>, vector<1x1xf32>
      tpu.vector_store %arg3[%c0_48, %c0_49], %52 {strides = array<i32>} : memref<1x1xf32, #tpu.memory_space<vmem>>, vector<1x1xf32>,
    } else {
    }
    return
  }
  func.func @transform_0(%arg0: i32) -> (i32, i32, i32) {
    %c0_i32 = arith.constant 0 : i32
    %c0_i32_0 = arith.constant 0 : i32
    %c0_i32_1 = arith.constant 0 : i32
    return %c0_i32, %arg0, %c0_i32_0 : i32, i32, i32
  }
  func.func @transform_1(%arg0: i32) -> (i32, i32, i32) {
    %c0_i32 = arith.constant 0 : i32
    %c0_i32_0 = arith.constant 0 : i32
    %c0_i32_1 = arith.constant 0 : i32
    return %c0_i32, %arg0, %c0_i32_0 : i32, i32, i32
  }
  func.func @transform_2(%arg0: i32) -> (i32, i32) {
    %c0_i32 = arith.constant 0 : i32
    %c0_i32_0 = arith.constant 0 : i32
    %c0_i32_1 = arith.constant 0 : i32
    return %c0_i32, %c0_i32_0 : i32, i32
  }
}

</mosaic_0001>

<bundles_post_ra>
// kernel: tpu_custom_call.1
= control target key start
LH: loop header
LB: loop body
LE: loop exit
PB: predicated region body
PF: predicated region fallthrough
CT: control target
= control target key end

     0   :  { %7 = vsyncpa [#allocation6], 0  ;;  %s324_s0 = inlined_call_operand.hbm [shape: f32[2,8,128], index: 0, kind: input, shape index: {}]   ;;  %s325_s1 = inlined_call_operand.hbm [shape: bf16[2,8,128], index: 1, kind: input, shape index: {}]   ;;  %s326_s2 = inlined_call_operand.hbm [shape: f32[1,1], index: 2, kind: output, shape index: {}]  }
   0x1   :  { %8 = vsyncpa [#allocation9], 0 }
   0x2   :  { %9 = vsyncpa [#allocation7], 0  ;;  %s286_s9 = smov [#allocation5]  }
   0x3   :  { %s15_s10 = sshll.u32 %s286_s9, 4  ;;  %s16_s10 = int_to_ptr.vmem [resolvable:$true] %s15_s10 }
   0x4   :  { %s228_s11 = scalar_lea.vmem %s16_s10, 256  ;;  %p233_p1 = scmp.lt.s32.totalorder %s16_s10, %s16_s10 }
   0x5   :  { %p229_p0 = scmp.ne.s32.totalorder %s16_s10, %s228_s11  ;;  %p234_p2 = scmp.lt.s32.totalorder %s228_s11, %s228_s11 }
   0x7   :  { %p235_p3 = por %p234_p2, %p233_p1 }
   0x9   :  { %p236_p4 = pnand %p235_p3, %p229_p0 }
   0xb   :  { %239 = shalt.err (!%p236_p4)
}
   0xc   :  { %s287_s12 = smov 128   ;;  %s288_s13 = smov 8  }
   0xd   :  { %21 = dma.hbm_to_vmem [thread:$0]  %s324_s0, 256, %s16_s10, [#allocation6], %s287_s12, %s287_s12, %s288_s13  }
   0xe   :  { %s289_s16 = smov [#allocation8]  }
   0xf   :  { %s27_s17 = sshll.u32 %s289_s16, 4  ;;  %s28_s17 = int_to_ptr.vmem [resolvable:$true] %s27_s17 }
  0x10   :  { %s248_s18 = scalar_lea.vmem %s28_s17, 128  ;;  %p253_p6 = scmp.lt.s32.totalorder %s28_s17, %s28_s17 }
  0x11   :  { %p249_p5 = scmp.ne.s32.totalorder %s28_s17, %s248_s18  ;;  %p254_p7 = scmp.lt.s32.totalorder %s248_s18, %s248_s18 }
  0x13   :  { %p255_p8 = por %p254_p7, %p253_p6 }
  0x15   :  { %p256_p9 = pnand %p255_p8, %p249_p5 }
  0x17   :  { %259 = shalt.err (!%p256_p9)
}
  0x18   :  { %s290_s19 = smov 64   ;;  %s291_s20 = smov 4  }
  0x19   :  { %33 = dma.hbm_to_vmem [thread:$0]  %s325_s1, 128, %s28_s17, [#allocation9], %s290_s19, %s290_s19, %s291_s20  }
  0x1a   :  { %280 = dma.done.wait [#allocation6], 256  }
  0x1b   :  { %281 = vsyncadd [#allocation6], 4294967040 }
  0x1c   :  { %282 = dma.done.wait [#allocation9], 128  }
  0x1d   :  { %283 = vsyncadd [#allocation9], 4294967168  ;;  %v292_v0 = vmov 0.0   ;;  %v51_v1 = vld [vmem:[#allocation5 + $0x8] sm:$0xff]  ;;  %v50_v2 = vld [vmem:[#allocation5] sm:$0xff]  ;;  %vm125_vm0 = vcmask 1040384  }
  0x1e   :  { %47 = vst [vmem:[#allocation3 + $0x1] sm:$0x1] %v292_v0  ;;  %44 = vst [vmem:[#allocation2] sm:$0x1] %v292_v0  ;;  %v199_v3 = vld [vmem:[#allocation8] sm:$0xff]   ;;  %v57_v4 = vmul.f32 0.5, %v51_v1 }
  0x1f   :  { %45 = vst [vmem:[#allocation2 + $0x1] sm:$0x1] %v292_v0  ;;  %46 = vst [vmem:[#allocation3] sm:$0x1] %v292_v0  ;;  %v56_v5 = vmul.f32 0.5, %v50_v2  ;;  %v201_v6 = vunpack.c.h.bf16 %v199_v3  ;;  %v200_v7 = vunpack.c.l.bf16 %v199_v3  ;;  %vm163_vm1 = vcmask 1041409  }
  0x20   :  { %48 = vst [vmem:[#allocation4] sm:$0x1] %v292_v0  ;;  %49 = vst [vmem:[#allocation4 + $0x1] sm:$0x1] %v292_v0  ;;  %212 = vtanh.f32 %v57_v4  ;;  %vm166_vm2 = vcmask 1024   ;;  %s293_s0 = smov [#allocation10]  }
  0x21   :  { %v110_v8 = vrot.slane %v201_v6, 4  ;;  %v104_v9 = vrot.slane %v200_v7, 4  ;;  %214 = vtanh.f32 %v56_v5  ;;  %s188_s1 = sshll.u32 %s293_s0, 4  ;;  %vm180_vm3 = vcmask 0   ;;  %s189_s1 = int_to_ptr.vmem [resolvable:$true] %s188_s1 }
  0x22   :  { %s260_s24 = scalar_lea.vmem %s189_s1, 16  ;;  %s264_s25 = scalar_lea.vmem %s189_s1, 32 }
  0x23   :  { %v111_v10 = vadd.f32 %v201_v6, %v110_v8  ;;  %v105_v11 = vadd.f32 %v200_v7, %v104_v9  ;;  %p261_p10 = scmp.ne.s32.totalorder %s189_s1, %s260_s24  ;;  %p265_p11 = scmp.lt.s32.totalorder %s189_s1, %s189_s1 }
  0x24   :  { %p266_p12 = scmp.lt.s32.totalorder %s264_s25, %s260_s24 }
  0x25   :  { %v112_v12 = vrot.slane %v111_v10, 2  ;;  %v106_v13 = vrot.slane %v105_v11, 2  ;;  %v85_v48 = vld [vmem:[#allocation3 + $0x1] sm:$0x1]  ;;  %v64_v59 = vld [vmem:[#allocation2] sm:$0x1] }
  0x26   :  { %v84_v52 = vld [vmem:[#allocation3] sm:$0x1]  ;;  %v65_v55 = vld [vmem:[#allocation2 + $0x1] sm:$0x1]  ;;  %p267_p13 = por %p266_p12, %p265_p11 }
  0x27   :  { %v113_v14 = vadd.f32 %v112_v12, %v111_v10  ;;  %v107_v15 = vadd.f32 %v106_v13, %v105_v11  ;;  %v103_v18 = vld [vmem:[#allocation4 + $0x1] sm:$0x1]  ;;  %v102_v19 = vld [vmem:[#allocation4] sm:$0x1] }
  0x28   :  { %p268_p0 = pnand %p267_p13, %p261_p10 }
  0x29   :  { %v114_v16 = vrot.slane %v113_v14, 1  ;;  %v108_v17 = vrot.slane %v107_v15, 1 }
  0x2b   :  { %v115_v20 = vadd.f32 %v114_v16, %v113_v14  ;;  %v109_v21 = vadd.f32 %v108_v17, %v107_v15 }
  0x2d   :  { %v117_v22 = vadd.f32 %v115_v20, %v103_v18  ;;  %v116_v23 = vadd.f32 %v109_v21, %v102_v19  ;;  %v213_v24 = vpop.eup %212 }
  0x2e   :  { %v215_v25 = vpop.eup %214  ;;  %v61_v26 = vadd.f32 1.0, %v213_v24 }
  0x2f   :  { %119 = vst [vmem:[#allocation4 + $0x1] sm:$0x1] %v117_v22  ;;  %118 = vst [vmem:[#allocation4] sm:$0x1] %v116_v23  ;;  %v60_v27 = vadd.f32 1.0, %v215_v25 }
  0x30   :  { %v63_v28 = vmul.f32 0.5, %v61_v26 }
  0x31   :  { %v62_v29 = vmul.f32 0.5, %v60_v27 }
  0x32   :  { %v92_v30 = vrot.slane %v63_v28, 4  ;;  %v67_v31 = vmul.f32 %v201_v6, %v63_v28 }
  0x33   :  { %v86_v32 = vrot.slane %v62_v29, 4  ;;  %v66_v33 = vmul.f32 %v200_v7, %v62_v29 }
  0x34   :  { %v93_v34 = vadd.f32 %v92_v30, %v63_v28  ;;  %v74_v35 = vrot.slane %v67_v31, 4 }
  0x35   :  { %v87_v36 = vadd.f32 %v86_v32, %v62_v29  ;;  %v68_v37 = vrot.slane %v66_v33, 4 }
  0x36   :  { %v94_v38 = vrot.slane %v93_v34, 2  ;;  %v75_v39 = vadd.f32 %v74_v35, %v67_v31  ;;  %v141_v1 = vld [vmem:[#allocation4 + $0x1] sm:$0x1]  ;;  %v140_v4 = vld [vmem:[#allocation4] sm:$0x1] }
  0x37   :  { %v88_v40 = vrot.slane %v87_v36, 2  ;;  %v69_v41 = vadd.f32 %v68_v37, %v66_v33  ;;  %v145_v6 = vsel %vm125_vm0, %v141_v1, 0.0  ;;  %v142_v7 = vsel %vm125_vm0, %v140_v4, 0.0 }
  0x38   :  { %v95_v42 = vadd.f32 %v94_v38, %v93_v34  ;;  %v76_v43 = vrot.slane %v75_v39, 2 }
  0x39   :  { %v89_v44 = vadd.f32 %v88_v40, %v87_v36  ;;  %v70_v45 = vrot.slane %v69_v41, 2 }
  0x3a   :  { %v96_v46 = vrot.slane %v95_v42, 1  ;;  %v77_v47 = vadd.f32 %v76_v43, %v75_v39 }
  0x3b   :  { %v90_v49 = vrot.slane %v89_v44, 1  ;;  %v71_v50 = vadd.f32 %v70_v45, %v69_v41 }
  0x3c   :  { %v97_v51 = vadd.f32 %v96_v46, %v95_v42  ;;  %v78_v53 = vrot.slane %v77_v47, 1 }
  0x3d   :  { %v91_v54 = vadd.f32 %v90_v49, %v89_v44  ;;  %v72_v56 = vrot.slane %v71_v50, 1 }
  0x3e   :  { %v99_v57 = vadd.f32 %v97_v51, %v85_v48  ;;  %v79_v58 = vadd.f32 %v78_v53, %v77_v47 }
  0x3f   :  { %v98_v60 = vadd.f32 %v91_v54, %v84_v52  ;;  %v73_v61 = vadd.f32 %v72_v56, %v71_v50 }
  0x40   :  { %101 = vst [vmem:[#allocation3 + $0x1] sm:$0x1] %v99_v57  ;;  %v81_v62 = vadd.f32 %v79_v58, %v65_v55 }
  0x41   :  { %100 = vst [vmem:[#allocation3] sm:$0x1] %v98_v60  ;;  %v80_v63 = vadd.f32 %v73_v61, %v64_v59 }
  0x42   :  { %83 = vst [vmem:[#allocation2 + $0x1] sm:$0x1] %v81_v62 }
  0x43   :  { %82 = vst [vmem:[#allocation2] sm:$0x1] %v80_v63 }
  0x47   :  { %v133_v0 = vld [vmem:[#allocation3 + $0x1] sm:$0x1] }
  0x48   :  { %v137_v2 = vsel %vm125_vm0, %v133_v0, 0.0  ;;  %v132_v3 = vld [vmem:[#allocation3] sm:$0x1] }
  0x49   :  { %138 = vadd.xlane.f32.xlu0 %v137_v2  ;;  %v134_v5 = vsel %vm125_vm0, %v132_v3, 0.0  ;;  %v124_v8 = vld [vmem:[#allocation2 + $0x1] sm:$0x1] }
  0x4a   :  { %135 = vadd.xlane.f32.xlu1 %v134_v5  ;;  %v123_v9 = vld [vmem:[#allocation2] sm:$0x1]  ;;  %v129_v10 = vsel %vm125_vm0, %v124_v8, 0.0 }
  0x4b   :  { %v126_v11 = vsel %vm125_vm0, %v123_v9, 0.0 }
  0x4d   :  { %146 = vadd.xlane.f32.xlu0 %v145_v6 }
  0x4e   :  { %143 = vadd.xlane.f32.xlu1 %v142_v7 }
  0x51   :  { %130 = vadd.xlane.f32.xlu0 %v129_v10 }
  0x52   :  { %127 = vadd.xlane.f32.xlu1 %v126_v11 }
  0xd2   :  { %v139_v12 = vpop.xlane.xlu0 %138 }
  0xd3   :  { %v136_v13 = vpop.xlane.xlu1 %135 }
  0xd6   :  { %v147_v14 = vpop.xlane.xlu0 %146 }
  0xd7   :  { %v153_v15 = vadd.f32 %v147_v14, %v139_v12  ;;  %v144_v16 = vpop.xlane.xlu1 %143 }
  0xd8   :  { %v152_v17 = vadd.f32 %v144_v16, %v136_v13 }
  0xd9   :  { %v155_v18 = vadd.f32 1e-06, %v153_v15 }
  0xda   :  { %v154_v19 = vadd.f32 1e-06, %v152_v17  ;;  %v131_v20 = vpop.xlane.xlu0 %130 }
  0xdb   :  { %216 = vrcp.f32 %v155_v18  ;;  %v128_v21 = vpop.xlane.xlu1 %127  ;;  %v149_v22 = vmul.f32 2.0, %v131_v20 }
  0xdc   :  { %218 = vrcp.f32 %v154_v19  ;;  %v148_v23 = vmul.f32 2.0, %v128_v21 }
  0xdd   :  { %v151_v24 = vadd.f32 1e-06, %v149_v22 }
  0xde   :  { %v150_v25 = vadd.f32 1e-06, %v148_v23 }
  0xe8   :  { %v217_v26 = vpop.eup %216 }
  0xe9   :  { %v219_v27 = vpop.eup %218  ;;  %v159_v28 = vmul.f32 %v217_v26, %v151_v24 }
  0xea   :  { %v157_v30 = vmul.f32 %v219_v27, %v150_v25 }
  0xeb   :  { %v162_v29 = vrot.slane %v159_v28, 7 }
  0xed   :  { %v164_v31 = vsel %vm163_vm1, %v162_v29, %v157_v30 }
  0xee   :  { %v167_v32 = vsel %vm166_vm2, %v164_v31, 0.0 }
  0xef   :  { %168 = vadd.xlane.f32.xlu0 %v167_v32 }
 0x178   :  { %v169_v33 = vpop.xlane.xlu0 %168 }
 0x179   :  { %v170_v34 = vrot.slane %v169_v33, 4 }
 0x17b   :  { %v171_v35 = vadd.f32 %v170_v34, %v169_v33 }
 0x17d   :  { %v172_v36 = vrot.slane %v171_v35, 2 }
 0x17f   :  { %v173_v37 = vadd.f32 %v172_v36, %v171_v35 }
 0x181   :  { %v174_v38 = vrot.slane %v173_v37, 1 }
 0x183   :  { %v175_v39 = vadd.f32 %v174_v38, %v173_v37 }
 0x185   :  { %202 = vpush %v175_v39 }
 0x1b6   :  { %s203_s23 = spop %202 }
 0x1b7   :  { %v177_v40 = vstv %s203_s23 }
 0x1b8   :  { %v179_v41 = vmul.f32 0.5, %v177_v40 }
 0x1ba   :  { %181 = vst.msk [vmem:[#allocation10] sm:$0x1] %vm180_vm3, %v179_v41 }
 0x1bb   :  { %271 = shalt.err (!%p268_p0)
}
 0x1bc   :  { %191 = dma.vmem_to_hbm [thread:$0]  %s189_s1, 16, %s326_s2, [#allocation7]  }
 0x1bd   :  { %284 = dma.done.wait [#allocation7], 16  }
 0x1be   :  { %285 = vsyncadd [#allocation7], 4294967280 }
 0x1bf   :  { %195 = vsyncpa [#allocation6], 1 }
 0x1c0   :  { %196 = vsyncpa [#allocation9], 1 }
 0x1c1   :  { %197 = vsyncpa [#allocation7], 1 }

</bundles_post_ra>
